<compile_context>
chip_gen: v6e
topology: v6e:2x2x1
jax: 0.10.0
libtpu: 0.0.40
codegen_flags: <defaults>
</compile_context>

<pallas_src>
import jax
import jax.numpy as jnp
from jax.experimental import pallas as pl
from jax.experimental.pallas import tpu as pltpu


def _make_outconv_kernel(cin: int, cout: int):
    def kernel(w_ref, b_ref, x_ref, o_ref):
        # w_ref: (Cout, Cin) in SMEM, b_ref: (Cout,) in SMEM
        # x_ref: (1, Cin, TR, 128) in VMEM, o_ref: (1, Cout, TR, 128) in VMEM
        for co in range(cout):                       # static, fully unrolled
            acc = x_ref[0, 0] * w_ref[co, 0]         # (TR, 128) dense vregs
            for ci in range(1, cin):
                acc = acc + x_ref[0, ci] * w_ref[co, ci]
            acc = acc + b_ref[co]
            # Direct lane-dense per-channel store (no concatenate/relayout).
            o_ref[0, co] = jax.nn.sigmoid(acc).astype(o_ref.dtype)

    return kernel


def _plan_tiling(hw: int, cin: int, cout: int, dtype_bytes: int = 4,
                 vmem_budget_bytes: int = 6 * 1024 * 1024):
    """Pick TR (rows of 128 lanes per tile) and padded extents.

    Returns (TR, R_pad, HW_pad). The double-buffered in+out VMEM footprint is
    2 * (cin + cout) * dtype_bytes * TR * 128 <= vmem_budget_bytes, which is
    safely below the default scoped VMEM limit on v5e/v6e/v7x.
    """
    r = pl.cdiv(hw, 128)                              # rows of 128 lanes
    per_row = 2 * (cin + cout) * 128 * dtype_bytes    # double-buffered bytes/row
    cap = max(8, (vmem_budget_bytes // per_row) // 8 * 8)
    if r <= cap:
        tr = r            # full row extent -> always layout-legal
        r_pad = r
    else:
        tr = cap          # multiple of 8 -> satisfies (8,128) block rule
        r_pad = pl.cdiv(r, tr) * tr
    return tr, r_pad, r_pad * 128


def out_conv(x, weight, bias):
    """Equivalent of torch.sigmoid(nn.Conv2d(Cin, Cout, kernel_size=1)(x)).

    x:      (N, C_in, H, W)   float32
    weight: (C_out, C_in, 1, 1)
    bias:   (C_out,)
    returns (N, C_out, H, W)
    """
    N, Cin, H, W = x.shape
    Cout = weight.shape[0]
    HW = H * W

    TR, R_pad, HW_pad = _plan_tiling(HW, Cin, Cout)
    num_row_tiles = R_pad // TR

    # NCHW is already (N, C, H*W): the reshape is free. Pad the pixel axis so
    # it factors as (rows, 128) -> lane-dense, unmasked loads/stores.
    x3 = x.reshape(N, Cin, HW)
    if HW_pad != HW:
        x3 = jnp.pad(x3, ((0, 0), (0, 0), (0, HW_pad - HW)))
    x4 = x3.reshape(N, Cin, R_pad, 128)

    w2 = weight.reshape(Cout, Cin)
    b1 = bias.reshape(Cout)

    M = N * HW_pad
    cost = pl.CostEstimate(
        flops=2 * M * Cin * Cout,
        transcendentals=M * Cout,
        bytes_accessed=4 * M * (Cin + Cout) + 4 * Cout * (Cin + 1),
    )

    out4 = pl.pallas_call(
        _make_outconv_kernel(Cin, Cout),
        out_shape=jax.ShapeDtypeStruct((N, Cout, R_pad, 128), x.dtype),
        grid=(N, num_row_tiles),
        in_specs=[
            # Tiny weights/bias live whole in SMEM, resident across the grid.
            pl.BlockSpec(memory_space=pltpu.MemorySpace.SMEM),
            pl.BlockSpec(memory_space=pltpu.MemorySpace.SMEM),
            # Pixel tiles: (TR, 128) packed vregs, double-buffered by default.
            pl.BlockSpec((1, Cin, TR, 128), lambda n, t: (n, 0, t, 0)),
        ],
        out_specs=pl.BlockSpec((1, Cout, TR, 128), lambda n, t: (n, 0, t, 0)),
        compiler_params=pltpu.CompilerParams(
            dimension_semantics=("parallel", "parallel"),
        ),
        cost_estimate=cost,
    )(w2, b1, x4)

    out3 = out4.reshape(N, Cout, HW_pad)
    if HW_pad != HW:
        out3 = out3[:, :, :HW]
    return out3.reshape(N, Cout, H, W)


def reference(x, weight, bias):
    # Pure-JAX reference: 1x1 conv as einsum + sigmoid.
    y = jnp.einsum("nchw,oc->nohw", x, weight.reshape(weight.shape[0], -1))
    y = y + bias[None, :, None, None]
    return jax.nn.sigmoid(y)


if __name__ == "__main__":
    key = jax.random.PRNGKey(0)
    kx, kw, kb = jax.random.split(key, 3)

    N, Cin, Cout, Hs, Ws = 2, 4, 2, 16, 16

    x = jax.random.normal(kx, (N, Cin, Hs, Ws), dtype=jnp.float32)
    # Deterministic init matching nn.Conv2d shapes (kaiming-uniform-like bound).
    fan_in = Cin * 1 * 1
    bound = 1.0 / (fan_in ** 0.5)
    weight = jax.random.uniform(
        kw, (Cout, Cin, 1, 1), minval=-bound, maxval=bound, dtype=jnp.float32
    )
    bias = jax.random.uniform(
        kb, (Cout,), minval=-bound, maxval=bound, dtype=jnp.float32
    )

    out = out_conv(x, weight, bias)
    out = jax.block_until_ready(out)

    ref = reference(x, weight, bias)
    assert out.shape == (N, Cout, Hs, Ws)
    assert jnp.allclose(out, ref, atol=1e-5, rtol=1e-5)

    print("KERNEL_OK")
</pallas_src>

<mosaic_0001>
module attributes {stable_mosaic.version = 11 : i64} {
  func.func @kernel(%arg0: i32, %arg1: i32, %arg2: memref<2x4xf32, #tpu.memory_space<smem>>, %arg3: memref<2xf32, #tpu.memory_space<smem>>, %arg4: memref<1x4x2x128xf32, #tpu.memory_space<vmem>>, %arg5: memref<1x2x2x128xf32, #tpu.memory_space<vmem>>) attributes {dimension_semantics = [#tpu.dimension_semantics<parallel>, #tpu.dimension_semantics<parallel>], iteration_bounds = array<i64: 2, 1>, scalar_prefetch = 0 : i64, scratch_operands = 0 : i64, tpu.core_type = #tpu.core_type<tc>, window_params = [{transform_indices = @transform_0, window_bounds = array<i64: 2, 4>}, {transform_indices = @transform_1, window_bounds = array<i64: 2>}, {transform_indices = @transform_2, window_bounds = array<i64: 1, 4, 2, 128>}, {transform_indices = @transform_3, window_bounds = array<i64: 1, 2, 2, 128>}]} {
    %c0 = arith.constant 0 : index
    %c0_0 = arith.constant 0 : index
    %c0_1 = arith.constant 0 : index
    %c0_2 = arith.constant 0 : index
    %0 = vector.load %arg4[%c0, %c0_0, %c0_1, %c0_2] : memref<1x4x2x128xf32, #tpu.memory_space<vmem>>, vector<1x1x2x128xf32>
    %1 = vector.shape_cast %0 : vector<1x1x2x128xf32> to vector<2x128xf32>
    %c0_3 = arith.constant 0 : index
    %c0_4 = arith.constant 0 : index
    %2 = memref.load %arg2[%c0_3, %c0_4] : memref<2x4xf32, #tpu.memory_space<smem>>
    %3 = vector.broadcast %2 : f32 to vector<2x128xf32>
    %4 = arith.mulf %1, %3 : vector<2x128xf32>
    %c0_5 = arith.constant 0 : index
    %c1 = arith.constant 1 : index
    %c0_6 = arith.constant 0 : index
    %c0_7 = arith.constant 0 : index
    %5 = vector.load %arg4[%c0_5, %c1, %c0_6, %c0_7] : memref<1x4x2x128xf32, #tpu.memory_space<vmem>>, vector<1x1x2x128xf32>
    %6 = vector.shape_cast %5 : vector<1x1x2x128xf32> to vector<2x128xf32>
    %c0_8 = arith.constant 0 : index
    %c1_9 = arith.constant 1 : index
    %7 = memref.load %arg2[%c0_8, %c1_9] : memref<2x4xf32, #tpu.memory_space<smem>>
    %8 = vector.broadcast %7 : f32 to vector<2x128xf32>
    %9 = arith.mulf %6, %8 : vector<2x128xf32>
    %10 = arith.addf %4, %9 : vector<2x128xf32>
    %c0_10 = arith.constant 0 : index
    %c2 = arith.constant 2 : index
    %c0_11 = arith.constant 0 : index
    %c0_12 = arith.constant 0 : index
    %11 = vector.load %arg4[%c0_10, %c2, %c0_11, %c0_12] : memref<1x4x2x128xf32, #tpu.memory_space<vmem>>, vector<1x1x2x128xf32>
    %12 = vector.shape_cast %11 : vector<1x1x2x128xf32> to vector<2x128xf32>
    %c0_13 = arith.constant 0 : index
    %c2_14 = arith.constant 2 : index
    %13 = memref.load %arg2[%c0_13, %c2_14] : memref<2x4xf32, #tpu.memory_space<smem>>
    %14 = vector.broadcast %13 : f32 to vector<2x128xf32>
    %15 = arith.mulf %12, %14 : vector<2x128xf32>
    %16 = arith.addf %10, %15 : vector<2x128xf32>
    %c0_15 = arith.constant 0 : index
    %c3 = arith.constant 3 : index
    %c0_16 = arith.constant 0 : index
    %c0_17 = arith.constant 0 : index
    %17 = vector.load %arg4[%c0_15, %c3, %c0_16, %c0_17] : memref<1x4x2x128xf32, #tpu.memory_space<vmem>>, vector<1x1x2x128xf32>
    %18 = vector.shape_cast %17 : vector<1x1x2x128xf32> to vector<2x128xf32>
    %c0_18 = arith.constant 0 : index
    %c3_19 = arith.constant 3 : index
    %19 = memref.load %arg2[%c0_18, %c3_19] : memref<2x4xf32, #tpu.memory_space<smem>>
    %20 = vector.broadcast %19 : f32 to vector<2x128xf32>
    %21 = arith.mulf %18, %20 : vector<2x128xf32>
    %22 = arith.addf %16, %21 : vector<2x128xf32>
    %c0_20 = arith.constant 0 : index
    %23 = memref.load %arg3[%c0_20] : memref<2xf32, #tpu.memory_space<smem>>
    %24 = vector.broadcast %23 : f32 to vector<2x128xf32>
    %25 = arith.addf %22, %24 : vector<2x128xf32>
    %26 = arith.negf %25 : vector<2x128xf32>
    %27 = math.exp %26 : vector<2x128xf32>
    %cst = arith.constant 1.000000e+00 : f32
    %28 = vector.broadcast %cst : f32 to vector<2x128xf32>
    %29 = arith.addf %28, %27 : vector<2x128xf32>
    %30 = arith.divf %28, %29 : vector<2x128xf32>
    %c0_21 = arith.constant 0 : index
    %c0_22 = arith.constant 0 : index
    %c0_23 = arith.constant 0 : index
    %c0_24 = arith.constant 0 : index
    %31 = vector.load %arg5[%c0_21, %c0_22, %c0_23, %c0_24] : memref<1x2x2x128xf32, #tpu.memory_space<vmem>>, vector<1x1x2x128xf32>
    %32 = vector.shape_cast %31 : vector<1x1x2x128xf32> to vector<2x128xf32>
    %33 = vector.shape_cast %30 : vector<2x128xf32> to vector<1x1x2x128xf32>
    tpu.vector_store %arg5[%c0_21, %c0_22, %c0_23, %c0_24], %33 {strides = array<i32>} : memref<1x2x2x128xf32, #tpu.memory_space<vmem>>, vector<1x1x2x128xf32>,
    %c0_25 = arith.constant 0 : index
    %c0_26 = arith.constant 0 : index
    %c0_27 = arith.constant 0 : index
    %c0_28 = arith.constant 0 : index
    %34 = vector.load %arg4[%c0_25, %c0_26, %c0_27, %c0_28] : memref<1x4x2x128xf32, #tpu.memory_space<vmem>>, vector<1x1x2x128xf32>
    %35 = vector.shape_cast %34 : vector<1x1x2x128xf32> to vector<2x128xf32>
    %c1_29 = arith.constant 1 : index
    %c0_30 = arith.constant 0 : index
    %36 = memref.load %arg2[%c1_29, %c0_30] : memref<2x4xf32, #tpu.memory_space<smem>>
    %37 = vector.broadcast %36 : f32 to vector<2x128xf32>
    %38 = arith.mulf %35, %37 : vector<2x128xf32>
    %c0_31 = arith.constant 0 : index
    %c1_32 = arith.constant 1 : index
    %c0_33 = arith.constant 0 : index
    %c0_34 = arith.constant 0 : index
    %39 = vector.load %arg4[%c0_31, %c1_32, %c0_33, %c0_34] : memref<1x4x2x128xf32, #tpu.memory_space<vmem>>, vector<1x1x2x128xf32>
    %40 = vector.shape_cast %39 : vector<1x1x2x128xf32> to vector<2x128xf32>
    %c1_35 = arith.constant 1 : index
    %c1_36 = arith.constant 1 : index
    %41 = memref.load %arg2[%c1_35, %c1_36] : memref<2x4xf32, #tpu.memory_space<smem>>
    %42 = vector.broadcast %41 : f32 to vector<2x128xf32>
    %43 = arith.mulf %40, %42 : vector<2x128xf32>
    %44 = arith.addf %38, %43 : vector<2x128xf32>
    %c0_37 = arith.constant 0 : index
    %c2_38 = arith.constant 2 : index
    %c0_39 = arith.constant 0 : index
    %c0_40 = arith.constant 0 : index
    %45 = vector.load %arg4[%c0_37, %c2_38, %c0_39, %c0_40] : memref<1x4x2x128xf32, #tpu.memory_space<vmem>>, vector<1x1x2x128xf32>
    %46 = vector.shape_cast %45 : vector<1x1x2x128xf32> to vector<2x128xf32>
    %c1_41 = arith.constant 1 : index
    %c2_42 = arith.constant 2 : index
    %47 = memref.load %arg2[%c1_41, %c2_42] : memref<2x4xf32, #tpu.memory_space<smem>>
    %48 = vector.broadcast %47 : f32 to vector<2x128xf32>
    %49 = arith.mulf %46, %48 : vector<2x128xf32>
    %50 = arith.addf %44, %49 : vector<2x128xf32>
    %c0_43 = arith.constant 0 : index
    %c3_44 = arith.constant 3 : index
    %c0_45 = arith.constant 0 : index
    %c0_46 = arith.constant 0 : index
    %51 = vector.load %arg4[%c0_43, %c3_44, %c0_45, %c0_46] : memref<1x4x2x128xf32, #tpu.memory_space<vmem>>, vector<1x1x2x128xf32>
    %52 = vector.shape_cast %51 : vector<1x1x2x128xf32> to vector<2x128xf32>
    %c1_47 = arith.constant 1 : index
    %c3_48 = arith.constant 3 : index
    %53 = memref.load %arg2[%c1_47, %c3_48] : memref<2x4xf32, #tpu.memory_space<smem>>
    %54 = vector.broadcast %53 : f32 to vector<2x128xf32>
    %55 = arith.mulf %52, %54 : vector<2x128xf32>
    %56 = arith.addf %50, %55 : vector<2x128xf32>
    %c1_49 = arith.constant 1 : index
    %57 = memref.load %arg3[%c1_49] : memref<2xf32, #tpu.memory_space<smem>>
    %58 = vector.broadcast %57 : f32 to vector<2x128xf32>
    %59 = arith.addf %56, %58 : vector<2x128xf32>
    %60 = arith.negf %59 : vector<2x128xf32>
    %61 = math.exp %60 : vector<2x128xf32>
    %cst_50 = arith.constant 1.000000e+00 : f32
    %62 = vector.broadcast %cst_50 : f32 to vector<2x128xf32>
    %63 = arith.addf %62, %61 : vector<2x128xf32>
    %64 = arith.divf %62, %63 : vector<2x128xf32>
    %c0_51 = arith.constant 0 : index
    %c1_52 = arith.constant 1 : index
    %c0_53 = arith.constant 0 : index
    %c0_54 = arith.constant 0 : index
    %65 = vector.load %arg5[%c0_51, %c1_52, %c0_53, %c0_54] : memref<1x2x2x128xf32, #tpu.memory_space<vmem>>, vector<1x1x2x128xf32>
    %66 = vector.shape_cast %65 : vector<1x1x2x128xf32> to vector<2x128xf32>
    %67 = vector.shape_cast %64 : vector<2x128xf32> to vector<1x1x2x128xf32>
    tpu.vector_store %arg5[%c0_51, %c1_52, %c0_53, %c0_54], %67 {strides = array<i32>} : memref<1x2x2x128xf32, #tpu.memory_space<vmem>>, vector<1x1x2x128xf32>,
    return
  }
  func.func @transform_0(%arg0: i32, %arg1: i32) -> (i32, i32) {
    %c0_i32 = arith.constant 0 : i32
    %c0_i32_0 = arith.constant 0 : i32
    %c0_i32_1 = arith.constant 0 : i32
    return %c0_i32, %c0_i32_0 : i32, i32
  }
  func.func @transform_1(%arg0: i32, %arg1: i32) -> i32 {
    %c0_i32 = arith.constant 0 : i32
    %c0_i32_0 = arith.constant 0 : i32
    return %c0_i32 : i32
  }
  func.func @transform_2(%arg0: i32, %arg1: i32) -> (i32, i32, i32, i32) {
    %c0_i32 = arith.constant 0 : i32
    %c0_i32_0 = arith.constant 0 : i32
    %c0_i32_1 = arith.constant 0 : i32
    return %arg0, %c0_i32, %arg1, %c0_i32_0 : i32, i32, i32, i32
  }
  func.func @transform_3(%arg0: i32, %arg1: i32) -> (i32, i32, i32, i32) {
    %c0_i32 = arith.constant 0 : i32
    %c0_i32_0 = arith.constant 0 : i32
    %c0_i32_1 = arith.constant 0 : i32
    return %arg0, %c0_i32, %arg1, %c0_i32_0 : i32, i32, i32, i32
  }
}

</mosaic_0001>

<bundles_post_ra>
// kernel: tpu_custom_call.1
= control target key start
LH: loop header
LB: loop body
LE: loop exit
PB: predicated region body
PF: predicated region fallthrough
CT: control target
= control target key end

     0   :  { %s916_s0 = inlined_call_operand.hbm [shape: f32[2,4], index: 0, kind: input, shape index: {}]   ;;  %s917_s1 = inlined_call_operand.vmem [shape: f32[2], index: 1, kind: input, shape index: {}]   ;;  %s918_s2 = inlined_call_operand.hbm [shape: f32[2,4,2,128], index: 2, kind: input, shape index: {}]   ;;  %s919_s3 = inlined_call_operand.hbm [shape: f32[2,2,2,128], index: 3, kind: output, shape index: {}]  }
   0x1   :  { %921 = sst [smem:[#allocation14_spill]] %s916_s0 }
   0x2   :  { %8 = vsyncpa [#allocation5], 0 }
   0x3   :  { %9 = vsyncpa [#allocation6], 0 }
   0x4   :  { %10 = vsyncpa [#allocation3], 0 }
   0x5   :  { %12 = vsyncpa [#allocation3 + $0x1], 0 }
   0x6   :  { %13 = vsyncpa [#allocation4], 0 }
   0x7   :  { %15 = vsyncpa [#allocation4 + $0x1], 0  ;;  %s722_s12 = smov 0   ;;  %s724_s13 = smov 0  }
   0x8   :  { %s726_s14 = smov 0   ;;  %s728_s15 = smov 0  }
   0x9   :  { %s730_s16 = smov 0   ;;  %s732_s17 = smov 0  }
   0xa LB: > { %s417_s18 = sadd.s32 4294967295, %s692_s17   ;;  %s418_s19 = sadd.s32 4294967294, %s692_s17   ;;  %s692_s17 = sphi %s732_s17, %s21_s17   ;;  %s688_s16 = sphi %s730_s16, %s937_s16   ;;  %s684_s15 = sphi %s728_s15, %s936_s15   ;;  %s680_s14 = sphi %s726_s14, %s935_s14   ;;  %s676_s13 = sphi %s724_s13, %s934_s13   ;;  %s672_s12 = sphi %s722_s12, %s933_s12  }
   0xb   : > { %s84_s20 = sadd.s32 1, %s680_s14  ;;  %p91_p0 = scmp.ne.s32.totalorder %s680_s14, %s676_s13 }
   0xc   : > { %p92_p1 = scmp.eq.s32.totalorder %s692_s17, 0  ;;  %p97_p2 = scmp.ne.s32.totalorder %s676_s13, %s672_s12 }
   0xd   : > { %p760_p3 = scmp.eq.s32.totalorder %s417_s18, 0  ;;  %p123_p4 = scmp.eq.s32.totalorder %s417_s18, 1 }
   0xe   : > { %p93_p5 = por %p92_p1, %p91_p0  ;;  %p129_p6 = scmp.eq.s32.totalorder %s418_s19, 1 }
   0xf   : > { %p766_p7 = por %p760_p3, %p97_p2  ;;  %p770_p8 = por %p123_p4, %p91_p0 }
  0x10   : > { %p774_p9 = por %p129_p6, %p97_p2  ;;  %p419_p10 = scmp.ge.s32.totalorder %s692_s17, 1 }
  0x11   : > { %s924_s23 = scalar_select %p770_p8, 1, 0 }
  0x12   : > { %s925_s24 = scalar_select %p774_p9, 1, 0 }
  0x13   : > { %p136_p11 = scmp.lt.s32.totalorder %s692_s17, 3  ;;  %p484_p1 = scmp.lt.s32.totalorder %s692_s17, 2 }
  0x14   : > { %s158_s28 = sshll.u32 %s917_s1, 4  ;;  %s169_s4 = sand.u32 1, %s680_s14   ;;  %s159_s28 = int_to_ptr.vmem [resolvable:$true] %s158_s28 }
  0x15   : > { %p781_p13 = pnand %p419_p10, %p136_p11  ;;  %p791_p4 = pnand %p484_p1, %p93_p5 }
  0x16   : > { %s33_s5 = sadd.s32 1, %s688_s16  ;;  %s694_s6 = smov [#allocation2]  }
  0x17   : > { %p467_p0 = pneg %p781_p13  ;;  %s929_s0 = sld [smem:[#allocation14_spill]] }
  0x18   : > { %s561_s9 = scalar_lea.vmem %s159_s28, 16  ;;  %p569_p1 = scmp.lt.s32.totalorder %s159_s28, %s159_s28 }
  0x19   : > { %p797_p2 = pnand %p467_p0, %p760_p3  ;;  %p562_p5 = scmp.ne.s32.totalorder %s159_s28, %s561_s9 }
  0x1a   : > { %p570_p0 = scmp.lt.s32.totalorder %s561_s9, %s561_s9 }
  0x1b   : > { %p563_p6 = pneg %p797_p2 }
  0x1c   : > { %p571_p12 = por %p570_p0, %p569_p1 }
  0x1d   : > { %470 = dma.hbm_to_smem (!%p797_p2), %s929_s0, 32, %s694_s6, [#allocation5]  }
  0x1e   : > { %p564_p10 = pnand %p563_p6, %p562_p5 }
  0x20   : > { %p565_p11 = pneg %p564_p10 }
  0x22   : > { %p572_p9 = pnand %p571_p12, %p565_p11 }
  0x24   : > { %575 = shalt.err (!%p572_p9)
}
  0x25   : > { %s695_s10 = smov [#allocation7]   ;;  %p35_p8 = scmp.ge.s32.totalorder %s33_s5, 2 }
  0x26   : > { %473 = dma.vmem_to_smem (!%p797_p2), %s159_s28, 16, %s695_s10, [#allocation6]  }
  0x27   : > { %s423_s11 = sshll.u32 %s169_s4, 3  ;;  %s453_s18 = sshll.u32 %s688_s16, 7 }
  0x28   : > { %s939_s5 = smov (%p35_p8, %s33_s5), 0  ;;  %s180_s27 = scalar_lea.hbm %s918_s2, %s453_s18 }
  0x29   : > { %s79_s6 = ssub.s32 %s688_s16, %s939_s5  ;;  %s173_s7 = scalar_lea.vmem [#allocation8], %s423_s11 }
  0x2a   : > { %s181_s8 = sshll.u32 %s173_s7, 4  ;;  %p82_p9 = scmp.eq.s32.totalorder %s79_s6, 0  ;;  %s182_s8 = int_to_ptr.vmem [resolvable:$true] %s181_s8 }
  0x2b   : > { %s170_s9 = scalar_lea.sflag [#allocation3], %s169_s4  ;;  %p578_p12 = pneg %p791_p4 }
  0x2c   : > { %s823_s30 = scalar_select %p82_p9, %s680_s14, %s84_s20  }
  0x2d   : > { %s589_s28 = scalar_lea.vmem %s182_s8, 128  ;;  %s696_s10 = smov [#allocation8]  }
  0x2e   : > { %p590_p2 = scmp.ne.s32.totalorder %s182_s8, %s589_s28  ;;  %s594_s0 = sshll.u32 %s696_s10, 4  ;;  %s595_s0 = int_to_ptr.vmem [resolvable:$false] %s594_s0 }
  0x2f   : > { %s596_s19 = scalar_lea.vmem %s595_s0, 256  ;;  %p597_p6 = scmp.lt.s32.totalorder %s182_s8, %s595_s0 }
  0x30   : > { %p592_p8 = pnand %p590_p2, %p578_p12  ;;  %p598_p10 = scmp.lt.s32.totalorder %s596_s19, %s589_s28 }
  0x32   : > { %p593_p5 = pneg %p592_p8  ;;  %p599_p11 = por %p598_p10, %p597_p6 }
  0x34   : > { %p600_p1 = pnand %p599_p11, %p593_p5 }
  0x36   : > { %603 = shalt.err (!%p600_p1)
}
  0x37   : > { %s697_s11 = smov 32   ;;  %s698_s20 = smov 2  }
  0x38   : > { %477 = dma.hbm_to_vmem [thread:$0]  (!%p791_p4), %s180_s27, 128, %s182_s8, %s170_s9, %s697_s11, %s697_s11, %s698_s20  }
  0x39   : > { %193 = sbr.rel (%p781_p13) target bundleno = 140 (0x8c), region = 32 }
  0x3e   : > { %655 = dma.done.wait (%p760_p3), [#allocation5], 32  }
  0x3f   : > { %657 = vsyncadd (%p760_p3), [#allocation5], 4294967264 }
  0x40   : > { %659 = dma.done.wait (%p760_p3), [#allocation6], 16  }
  0x41   : > { %661 = vsyncadd (%p760_p3), [#allocation6], 4294967280  ;;  %s840_s0 = sand.u32 1, %s676_s13  }
  0x42   : > { %s429_s25 = sshll.u32 %s840_s0, 3  ;;  %s204_s29 = scalar_lea.sflag [#allocation3], %s840_s0 }
  0x43   : > { %s844_s4 = scalar_lea.vmem [#allocation8], %s429_s25 }
  0x44   : > { %663 = dma.done.wait (%p766_p7), %s204_s29, 128  }
  0x45   : > { %665 = vsyncadd (%p766_p7), %s204_s29, 4294967168 }
  0x46   : > { %212 = sfence }
  0x47   : > { %s232_s18 = sld [smem:[#allocation2]]  ;;  %v231_v0 = vld [vmem:[%s844_s4] sm:$0x3]  ;;  %v431_v1 = vld [vmem:[%s844_s4 + $0x2] sm:$0x3]  ;;  %s430_s10 = sshll.u32 %s840_s0, 2 }
  0x48   : > { %s432_s21 = sld [smem:[#allocation2 + $0x1]]  ;;  %v433_v3 = vld [vmem:[%s844_s4 + $0x4] sm:$0x3]  ;;  %v435_v6 = vld [vmem:[%s844_s4 + $0x6] sm:$0x3]  ;;  %s230_s19 = scalar_lea.vmem [#allocation9], %s430_s10 }
  0x49   : > { %s434_s26 = sld [smem:[#allocation2 + $0x2]]  ;;  %v263_v11 = vld [vmem:[%s844_s4] sm:$0x3]  ;;  %v439_v14 = vld [vmem:[%s844_s4 + $0x2] sm:$0x3]  ;;  %s308_s11 = sshll.u32 %s230_s19, 4  ;;  %s863_s11 = int_to_ptr.vmem [resolvable:$true] %s308_s11 }
  0x4a   : > { %s436_s27 = sld [smem:[#allocation2 + $0x3]]  ;;  %v441_v16 = vld [vmem:[%s844_s4 + $0x4] sm:$0x3]  ;;  %v443_v20 = vld [vmem:[%s844_s4 + $0x6] sm:$0x3]  ;;  %s454_s20 = sshll.u32 %s684_s15, 6 }
  0x4b   : > { %s851_s6 = sld [smem:[#allocation7]]  ;;  %s868_s4 = scalar_lea.hbm %s919_s3, %s454_s20 }
  0x4c   : > { %s438_s7 = sld [smem:[#allocation2 + $0x80]]  ;;  %p930_p7 = scmp.ne.s32.totalorder %s924_s23, 0 }
  0x4d   : > { %v233_v2 = vstv %s232_s18  ;;  %s440_s22 = sld [smem:[#allocation2 + $0x81]]  ;;  %s294_s18 = scalar_lea.sflag [#allocation4], %s840_s0 }
  0x4e   : > { %v234_v4 = vmul.f32 %v233_v2, %v231_v0  ;;  %v238_v5 = vstv %s432_s21  ;;  %s442_s8 = sld [smem:[#allocation2 + $0x82]]  ;;  %s604_s21 = scalar_lea.vmem %s863_s11, 64 }
  0x4f   : > { %v239_v7 = vmul.f32 %v431_v1, %v238_v5  ;;  %v244_v8 = vstv %s434_s26  ;;  %s444_s9 = sld [smem:[#allocation2 + $0x83]]  ;;  %p605_p3 = scmp.ne.s32.totalorder %s863_s11, %s604_s21 }
  0x50   : > { %v245_v9 = vmul.f32 %v433_v3, %v244_v8  ;;  %v250_v10 = vstv %s436_s27  ;;  %s445_s28 = sld [smem:[#allocation7 + $0x1]]  ;;  %s699_s15 = smov [#allocation9]  }
  0x51   : > { %v240_v12 = vadd.f32 %v239_v7, %v234_v4  ;;  %v251_v13 = vmul.f32 %v435_v6, %v250_v10  ;;  %v254_v21 = vstv %s851_s6  ;;  %p606_p13 = pnand %p605_p3, %p930_p7  ;;  %s608_s26 = sshll.u32 %s699_s15, 4  ;;  %s609_s26 = int_to_ptr.vmem [resolvable:$false] %s608_s26 }
  0x52   : > { %v265_v15 = vstv %s438_s7  ;;  %s610_s27 = scalar_lea.vmem %s609_s26, 128  ;;  %p611_p0 = scmp.lt.s32.totalorder %s863_s11, %s609_s26 }
  0x53   : > { %v246_v17 = vadd.f32 %v245_v9, %v240_v12  ;;  %v266_v18 = vmul.f32 %v265_v15, %v263_v11  ;;  %v269_v19 = vstv %s440_s22  ;;  %p607_p4 = pneg %p606_p13  ;;  %p612_p9 = scmp.lt.s32.totalorder %s610_s27, %s604_s21 }
  0x54   : > { %v270_v22 = vmul.f32 %v439_v14, %v269_v19  ;;  %v274_v23 = vstv %s442_s8 }
  0x55   : > { %v252_v24 = vadd.f32 %v251_v13, %v246_v17  ;;  %v275_v25 = vmul.f32 %v441_v16, %v274_v23  ;;  %v279_v26 = vstv %s444_s9  ;;  %p613_p12 = por %p612_p9, %p611_p0 }
  0x56   : > { %v271_v27 = vadd.f32 %v270_v22, %v266_v18  ;;  %v280_v28 = vmul.f32 %v443_v20, %v279_v26  ;;  %v283_v32 = vstv %s445_s28 }
  0x57   : > { %v255_v29 = vadd.f32 %v254_v21, %v252_v24  ;;  %p614_p2 = pnand %p613_p12, %p607_p4 }
  0x58   : > { %v276_v30 = vadd.f32 %v275_v25, %v271_v27 }
  0x59   : > { %v437_v31 = vmul.f32 -1.442695, %v255_v29 }
  0x5a   : > { %v281_v33 = vadd.f32 %v280_v28, %v276_v30 }
  0x5b   : > { %542 = vpow2.f32 %v437_v31 }
  0x5c   : > { %v284_v34 = vadd.f32 %v283_v32, %v281_v33 }
  0x5e   : > { %v446_v35 = vmul.f32 -1.442695, %v284_v34 }
  0x60   : > { %544 = vpow2.f32 %v446_v35 }
  0x68   : > { %v543_v36 = vpop.eup %542 }
  0x69   : > { %v259_v37 = vadd.f32 1.0, %v543_v36 }
  0x6b   : > { %546 = vrcp.f32 %v259_v37 }
  0x6d   : > { %v545_v38 = vpop.eup %544 }
  0x6e   : > { %v288_v39 = vadd.f32 1.0, %v545_v38 }
  0x70   : > { %548 = vrcp.f32 %v288_v39 }
  0x78   : > { %v547_v40 = vpop.eup %546 }
  0x79   : > { %262 = vst [vmem:[%s230_s19] sm:$0x3] %v547_v40 }
  0x7d   : > { %v549_v41 = vpop.eup %548 }
  0x7e   : > { %447 = vst [vmem:[%s230_s19 + $0x2] sm:$0x3] %v549_v41 }
  0x7f   : > { %617 = shalt.err (!%p614_p2)
}
  0x80   : > { %s618_s6 = scalar_lea.hbm %s868_s4, 64  ;;  %s622_s8 = scalar_lea.hbm %s919_s3, 128 }
  0x81   : > { %p619_p8 = scmp.ne.s32.totalorder %s868_s4, %s618_s6  ;;  %p623_p10 = scmp.lt.s32.totalorder %s868_s4, %s919_s3 }
  0x82   : > { %p624_p11 = scmp.lt.s32.totalorder %s622_s8, %s618_s6 }
  0x83   : > { %p620_p5 = pnand %p619_p8, %p930_p7 }
  0x84   : > { %p625_p1 = por %p624_p11, %p623_p10 }
  0x85   : > { %p621_p6 = pneg %p620_p5 }
  0x87   : > { %p626_p3 = pnand %p625_p1, %p621_p6 }
  0x89   : > { %629 = shalt.err (!%p626_p3)
}
  0x8a   : > { %s700_s10 = smov 32   ;;  %s701_s19 = smov 2  }
  0x8b   : > { %465 = dma.vmem_to_hbm [thread:$0]  (%p930_p7), %s863_s11, 64, %s868_s4, %s294_s18, %s700_s10, %s700_s10, %s701_s19  }
  0x8c PF: > { %s323_s20 = sand.u32 1, %s672_s12   ;;  %p931_p13 = scmp.ne.s32.totalorder %s925_s24, 0 }
  0x8d   : > { %p932_p4 = scmp.ge.s32.totalorder %s692_s17, 2  ;;  %s324_s25 = scalar_lea.sflag [#allocation4], %s323_s20 }
  0x8f   : > { %p479_p0 = pnand %p932_p4, %p931_p13 }
  0x91   : > { %p480_p9 = pneg %p479_p0 }
  0x93   : > { %667 = dma.done.wait (%p480_p9), %s324_s25, 64  }
  0x94   : > { %669 = vsyncadd (%p480_p9), %s324_s25, 4294967232  ;;  %s21_s17 = sadd.s32 1, %s692_s17   ;;  %s933_s12 = smov %s676_s13 }
  0x95   : > { %p18_p12 = scmp.ge.s32.totalorder %s21_s17, 4   ;;  %s934_s13 = smov %s680_s14 }
  0x96   : > { %s935_s14 = smov %s823_s30  ;;  %s936_s15 = smov %s688_s16 }
  0x97   : > { %s937_s16 = smov %s939_s5  ;;  %20 = sbr.rel (!%p18_p12) target bundleno = 10 (0xa), region = 91 }
  0x9c   :  { %329 = vsyncpa [#allocation3], 1 }
  0x9d   :  { %331 = vsyncpa [#allocation3 + $0x1], 1 }
  0x9e   :  { %332 = vsyncpa [#allocation4], 1 }
  0x9f   :  { %334 = vsyncpa [#allocation4 + $0x1], 1 }
  0xa0   :  { %335 = vsyncpa [#allocation5], 1 }
  0xa1   :  { %337 = vsyncpa [#allocation5 + $0x1], 1 }
  0xa2   :  { %338 = vsyncpa [#allocation6], 1 }
  0xa3   :  { %340 = vsyncpa [#allocation6 + $0x1], 1 }

</bundles_post_ra>
